<compile_context>
chip_gen: v6e
topology: v6e:2x2x1
jax: 0.10.0
libtpu: 0.0.40
codegen_flags: <defaults>
</compile_context>

<pallas_src>
import functools

import jax
import jax.numpy as jnp
from jax.experimental import pallas as pl
from jax.experimental.pallas import tpu as pltpu

INPUT_SIZE = 784
HIDDEN = 50
HIDDEN_PAD = 64          # pad 50 -> 64 (multiple of 8 sublanes); exact math
NUM_CLASSES = 10
DEFAULT_TILE_B = 2048    # ~12.6 MiB double-buffered f32 x stream, fits 32 MiB scoped VMEM


def _round_up(n, m):
    return ((n + m - 1) // m) * m


def mlp_kernel(x_ref, w1_ref, b1_ref, w2_ref, b2_ref, o_ref):
    # x arrives as f32 (single HBM pass); cast to bf16 on the VPU for the MXU.
    x_bf = x_ref[...].astype(jnp.bfloat16)
    # fc1: (tile, 784) @ (784, 64) -> f32 accumulate on MXU
    h = jnp.dot(x_bf, w1_ref[...], preferred_element_type=jnp.float32)
    # bias + ReLU in f32 (VPU)
    h = jnp.maximum(h + b1_ref[...], 0.0)
    # fc2: (tile, 64) @ (64, 10), bf16 MXU inputs, f32 accumulate
    y = jnp.dot(h.astype(jnp.bfloat16), w2_ref[...],
                preferred_element_type=jnp.float32)
    o_ref[...] = (y + b2_ref[...]).astype(o_ref.dtype)


def prepare_params(w1_t, b1, w2_t, b2):
    """One-time parameter prep (hoisted out of the per-call path).

    w1_t: (784, 50) f32 (transpose of PyTorch fc1.weight), b1: (1, 50)
    w2_t: (50, 10)  f32 (transpose of PyTorch fc2.weight), b2: (1, 10)
    Returns hidden-padded (50 -> 64, zeros => exact) bf16 weights + f32 biases.
    """
    w1_p = jnp.pad(w1_t, ((0, 0), (0, HIDDEN_PAD - HIDDEN))).astype(jnp.bfloat16)
    b1_p = jnp.pad(b1, ((0, 0), (0, HIDDEN_PAD - HIDDEN))).astype(jnp.float32)
    w2_p = jnp.pad(w2_t, ((0, HIDDEN_PAD - HIDDEN), (0, 0))).astype(jnp.bfloat16)
    b2_p = b2.astype(jnp.float32)
    return w1_p, b1_p, w2_p, b2_p


@functools.partial(jax.jit, static_argnames=("tile_b",))
def nn_forward(x, w1_bf, b1_f, w2_bf, b2_f, *, tile_b=DEFAULT_TILE_B):
    """Pallas forward pass: relu(x @ W1^T + b1) @ W2^T + b2.

    x: (B, 784) float32. Weights/biases come from prepare_params().
    Returns (B, 10) float32.
    """
    B = x.shape[0]

    # Tile selection: multiple of 8 (block constraint), capped by tile_b, and
    # aimed at >= 2 grid steps so v7x megacore has something to shard.
    tile_b = _round_up(max(int(tile_b), 8), 8)
    half = _round_up(pl.cdiv(B, 2), 8)
    tile = max(8, min(tile_b, half))
    grid = (pl.cdiv(B, tile),)   # ragged last block: OOB rows masked on store

    cost = pl.CostEstimate(
        flops=2 * B * INPUT_SIZE * HIDDEN_PAD + 2 * B * HIDDEN_PAD * NUM_CLASSES,
        transcendentals=0,
        bytes_accessed=(B * INPUT_SIZE * 4 + B * NUM_CLASSES * 4
                        + INPUT_SIZE * HIDDEN_PAD * 2
                        + HIDDEN_PAD * NUM_CLASSES * 2
                        + HIDDEN_PAD * 4 + NUM_CLASSES * 4),
    )

    return pl.pallas_call(
        mlp_kernel,
        out_shape=jax.ShapeDtypeStruct((B, NUM_CLASSES), jnp.float32),
        grid_spec=pl.GridSpec(
            grid=grid,
            in_specs=[
                # x: batch-tiled, full 784 (full-dim last block is legal).
                pl.BlockSpec((tile, INPUT_SIZE), lambda i: (i, 0)),
                # Weights/biases resident across grid steps (constant index_map).
                pl.BlockSpec((INPUT_SIZE, HIDDEN_PAD), lambda i: (0, 0)),
                pl.BlockSpec((1, HIDDEN_PAD), lambda i: (0, 0)),
                pl.BlockSpec((HIDDEN_PAD, NUM_CLASSES), lambda i: (0, 0)),
                pl.BlockSpec((1, NUM_CLASSES), lambda i: (0, 0)),
            ],
            out_specs=pl.BlockSpec((tile, NUM_CLASSES), lambda i: (i, 0)),
        ),
        compiler_params=pltpu.CompilerParams(
            dimension_semantics=("parallel",),
            # Explicit limit so tile=2048 (f32 x, double-buffered) is safe on
            # v5e's 16 MiB default scoped VMEM; already the default on v6e/v7x.
            vmem_limit_bytes=32 * 1024 * 1024,
        ),
        cost_estimate=cost,
    )(x, w1_bf, b1_f, w2_bf, b2_f)


def init_params(key):
    """Deterministic param init matching nn.Linear shapes (Kaiming-uniform-ish)."""
    k1, k2, k3, k4 = jax.random.split(key, 4)
    lim1 = 1.0 / (INPUT_SIZE ** 0.5)
    lim2 = 1.0 / (HIDDEN ** 0.5)
    # PyTorch stores fc1.weight as (50, 784); we keep the transpose (784, 50).
    w1_t = jax.random.uniform(k1, (INPUT_SIZE, HIDDEN), jnp.float32, -lim1, lim1)
    b1 = jax.random.uniform(k2, (1, HIDDEN), jnp.float32, -lim1, lim1)
    w2_t = jax.random.uniform(k3, (HIDDEN, NUM_CLASSES), jnp.float32, -lim2, lim2)
    b2 = jax.random.uniform(k4, (1, NUM_CLASSES), jnp.float32, -lim2, lim2)
    return w1_t, b1, w2_t, b2


def _reference(x, w1_t, b1, w2_t, b2):
    return jnp.maximum(x @ w1_t + b1, 0.0) @ w2_t + b2


if __name__ == "__main__":
    key = jax.random.PRNGKey(0)
    kx, kx2, kp = jax.random.split(key, 3)

    w1_t, b1, w2_t, b2 = init_params(kp)
    params = prepare_params(w1_t, b1, w2_t, b2)   # hoisted one-time prep

    # Small batch (single tile, multiple of 8).
    batch = 8
    x = jax.random.normal(kx, (batch, INPUT_SIZE), jnp.float32)
    out = jax.block_until_ready(nn_forward(x, *params))
    ref = _reference(x, w1_t, b1, w2_t, b2)
    assert out.shape == (batch, NUM_CLASSES)
    # bf16 MXU inputs with f32 accumulation -> slightly looser tolerance.
    assert jnp.allclose(out, ref, atol=2e-2, rtol=2e-2)

    # Non-multiple batch: 2 grid steps (megacore-friendly) with a ragged
    # masked last block -- no wrapper-side batch pad.
    batch2 = 300
    x2 = jax.random.normal(kx2, (batch2, INPUT_SIZE), jnp.float32)
    out2 = jax.block_until_ready(nn_forward(x2, *params))
    ref2 = _reference(x2, w1_t, b1, w2_t, b2)
    assert out2.shape == (batch2, NUM_CLASSES)
    assert jnp.allclose(out2, ref2, atol=2e-2, rtol=2e-2)

    print("KERNEL_OK")
</pallas_src>

<mosaic_0001>
module attributes {stable_mosaic.version = 11 : i64} {
  func.func @mlp_kernel(%arg0: i32, %arg1: memref<8x784xf32, #tpu.memory_space<vmem>>, %arg2: memref<784x64xbf16, #tpu.memory_space<vmem>>, %arg3: memref<1x64xf32, #tpu.memory_space<vmem>>, %arg4: memref<64x10xbf16, #tpu.memory_space<vmem>>, %arg5: memref<1x10xf32, #tpu.memory_space<vmem>>, %arg6: memref<8x10xf32, #tpu.memory_space<vmem>>) attributes {dimension_semantics = [#tpu.dimension_semantics<parallel>], iteration_bounds = array<i64: 1>, scalar_prefetch = 0 : i64, scratch_operands = 0 : i64, tpu.core_type = #tpu.core_type<tc>, window_params = [{transform_indices = @transform_0, window_bounds = array<i64: 8, 784>}, {pipeline_mode = #tpu.pipeline_mode<synchronous>, transform_indices = @transform_1, window_bounds = array<i64: 784, 64>}, {pipeline_mode = #tpu.pipeline_mode<synchronous>, transform_indices = @transform_2, window_bounds = array<i64: 1, 64>}, {pipeline_mode = #tpu.pipeline_mode<synchronous>, transform_indices = @transform_3, window_bounds = array<i64: 64, 10>}, {pipeline_mode = #tpu.pipeline_mode<synchronous>, transform_indices = @transform_4, window_bounds = array<i64: 1, 10>}, {transform_indices = @transform_5, window_bounds = array<i64: 8, 10>}]} {
    %c0 = arith.constant 0 : index
    %c0_0 = arith.constant 0 : index
    %0 = vector.load %arg1[%c0, %c0_0] : memref<8x784xf32, #tpu.memory_space<vmem>>, vector<8x784xf32>
    %1 = arith.truncf %0 : vector<8x784xf32> to vector<8x784xbf16>
    %c0_1 = arith.constant 0 : index
    %c0_2 = arith.constant 0 : index
    %2 = vector.load %arg2[%c0_1, %c0_2] : memref<784x64xbf16, #tpu.memory_space<vmem>>, vector<784x64xbf16>
    %cst = arith.constant dense<0.000000e+00> : vector<8x64xf32>
    %3 = tpu.matmul %1, %2, %cst {dimension_numbers = #tpu.dot_dimension_numbers<[1], [0], [0], [1], [0, 0, 1, 1], [], []>} : vector<8x784xbf16>, vector<784x64xbf16>, vector<8x64xf32> -> vector<8x64xf32>
    %c0_3 = arith.constant 0 : index
    %c0_4 = arith.constant 0 : index
    %4 = vector.load %arg3[%c0_3, %c0_4] : memref<1x64xf32, #tpu.memory_space<vmem>>, vector<1x64xf32>
    %5 = vector.broadcast %4 : vector<1x64xf32> to vector<8x64xf32>
    %6 = arith.addf %3, %5 : vector<8x64xf32>
    %cst_5 = arith.constant 0.000000e+00 : f32
    %7 = vector.broadcast %cst_5 : f32 to vector<8x64xf32>
    %8 = arith.maximumf %6, %7 : vector<8x64xf32>
    %9 = arith.truncf %8 : vector<8x64xf32> to vector<8x64xbf16>
    %c0_6 = arith.constant 0 : index
    %c0_7 = arith.constant 0 : index
    %10 = vector.load %arg4[%c0_6, %c0_7] : memref<64x10xbf16, #tpu.memory_space<vmem>>, vector<64x10xbf16>
    %cst_8 = arith.constant dense<0.000000e+00> : vector<8x10xf32>
    %11 = tpu.matmul %9, %10, %cst_8 {dimension_numbers = #tpu.dot_dimension_numbers<[1], [0], [0], [1], [0, 0, 1, 1], [], []>} : vector<8x64xbf16>, vector<64x10xbf16>, vector<8x10xf32> -> vector<8x10xf32>
    %c0_9 = arith.constant 0 : index
    %c0_10 = arith.constant 0 : index
    %12 = vector.load %arg5[%c0_9, %c0_10] : memref<1x10xf32, #tpu.memory_space<vmem>>, vector<1x10xf32>
    %13 = vector.broadcast %12 : vector<1x10xf32> to vector<8x10xf32>
    %14 = arith.addf %11, %13 : vector<8x10xf32>
    %c0_11 = arith.constant 0 : index
    %c0_12 = arith.constant 0 : index
    %15 = vector.load %arg6[%c0_11, %c0_12] : memref<8x10xf32, #tpu.memory_space<vmem>>, vector<8x10xf32>
    tpu.vector_store %arg6[%c0_11, %c0_12], %14 {strides = array<i32>} : memref<8x10xf32, #tpu.memory_space<vmem>>, vector<8x10xf32>,
    return
  }
  func.func @transform_0(%arg0: i32) -> (i32, i32) {
    %c0_i32 = arith.constant 0 : i32
    %c0_i32_0 = arith.constant 0 : i32
    return %arg0, %c0_i32 : i32, i32
  }
  func.func @transform_1(%arg0: i32) -> (i32, i32) {
    %c0_i32 = arith.constant 0 : i32
    %c0_i32_0 = arith.constant 0 : i32
    %c0_i32_1 = arith.constant 0 : i32
    return %c0_i32, %c0_i32_0 : i32, i32
  }
  func.func @transform_2(%arg0: i32) -> (i32, i32) {
    %c0_i32 = arith.constant 0 : i32
    %c0_i32_0 = arith.constant 0 : i32
    %c0_i32_1 = arith.constant 0 : i32
    return %c0_i32, %c0_i32_0 : i32, i32
  }
  func.func @transform_3(%arg0: i32) -> (i32, i32) {
    %c0_i32 = arith.constant 0 : i32
    %c0_i32_0 = arith.constant 0 : i32
    %c0_i32_1 = arith.constant 0 : i32
    return %c0_i32, %c0_i32_0 : i32, i32
  }
  func.func @transform_4(%arg0: i32) -> (i32, i32) {
    %c0_i32 = arith.constant 0 : i32
    %c0_i32_0 = arith.constant 0 : i32
    %c0_i32_1 = arith.constant 0 : i32
    return %c0_i32, %c0_i32_0 : i32, i32
  }
  func.func @transform_5(%arg0: i32) -> (i32, i32) {
    %c0_i32 = arith.constant 0 : i32
    %c0_i32_0 = arith.constant 0 : i32
    return %arg0, %c0_i32 : i32, i32
  }
}

</mosaic_0001>

<bundles_post_ra>
// kernel: nn_forward.1
= control target key start
LH: loop header
LB: loop body
LE: loop exit
PB: predicated region body
PF: predicated region fallthrough
CT: control target
= control target key end

     0   :  { %v926_v44 = vmov 0.0   ;;  %vm927_vm0 = vmmov 0   ;;  %vm435_vm1 = vcmask 130048   ;;  %s1150_s0 = inlined_call_operand.vmem [shape: f32[8,784], index: 0, kind: input, shape index: {}]   ;;  %s1151_s1 = inlined_call_operand.vmem [shape: bf16[784,64], index: 1, kind: input, shape index: {}]   ;;  %s1152_s2 = inlined_call_operand.vmem [shape: f32[1,64], index: 2, kind: input, shape index: {}]   ;;  %s1153_s3 = inlined_call_operand.vmem [shape: bf16[64,10], index: 3, kind: input, shape index: {}]   ;;  %s1154_s4 = inlined_call_operand.vmem [shape: f32[1,10], index: 4, kind: input, shape index: {}]   ;;  %s1155_s5 = inlined_call_operand.hbm [shape: f32[8,10], index: 5, kind: output, shape index: {}]  }
   0x1   :  { %v851_v0 = vld [vmem:[%s1151_s1 + $0x78] sm:$0xff]   ;;  %v855_v4 = vld [vmem:[%s1151_s1 + $0x70] sm:$0xff]   ;;  %v859_v8 = vld [vmem:[%s1151_s1 + $0x68] sm:$0xff]  }
   0x2   :  { %v852_v1 = vld [vmem:[%s1151_s1 + $0x38] sm:$0xff]   ;;  %757 = vmatprep.subr.bf16.mxu0 %v851_v0  ;;  %v856_v5 = vld [vmem:[%s1151_s1 + $0x30] sm:$0xff]   ;;  %v860_v9 = vld [vmem:[%s1151_s1 + $0x28] sm:$0xff]  }
   0x3   :  { %v853_v2 = vld [vmem:[%s1151_s1 + $0xf8] sm:$0xff]   ;;  %758 = vmatpush3.bf16.msra.mxu0 %v852_v1  ;;  %v857_v6 = vld [vmem:[%s1151_s1 + $0xf0] sm:$0xff]   ;;  %v861_v10 = vld [vmem:[%s1151_s1 + $0xe8] sm:$0xff]  }
   0x4   :  { %v854_v3 = vld [vmem:[%s1151_s1 + $0xb8] sm:$0xff]   ;;  %779 = vmatprep.subr.bf16.mxu1 %v853_v2  ;;  %759 = vmatprep.subr.bf16.mxu0 %v855_v4  ;;  %v858_v7 = vld [vmem:[%s1151_s1 + $0xb0] sm:$0xff]   ;;  %v862_v11 = vld [vmem:[%s1151_s1 + $0xa8] sm:$0xff]  }
   0x5   :  { %780 = vmatpush3.bf16.msra.mxu1 %v854_v3  ;;  %v863_v12 = vld [vmem:[%s1151_s1 + $0x60] sm:$0xff]   ;;  %v867_v16 = vld [vmem:[%s1151_s1 + $0x58] sm:$0xff]   ;;  %v871_v20 = vld [vmem:[%s1151_s1 + $0x50] sm:$0xff]  }
   0x6   :  { %781 = vmatprep.subr.bf16.mxu1 %v857_v6  ;;  %v864_v13 = vld [vmem:[%s1151_s1 + $0x20] sm:$0xff]   ;;  %v868_v17 = vld [vmem:[%s1151_s1 + $0x18] sm:$0xff]   ;;  %v872_v21 = vld [vmem:[%s1151_s1 + $0x10] sm:$0xff]  }
   0x7   :  { %760 = vmatpush3.bf16.msra.mxu0 %v856_v5  ;;  %v865_v14 = vld [vmem:[%s1151_s1 + $0xe0] sm:$0xff]   ;;  %v869_v18 = vld [vmem:[%s1151_s1 + $0xd8] sm:$0xff]   ;;  %v873_v22 = vld [vmem:[%s1151_s1 + $0xd0] sm:$0xff]  }
   0x8   :  { %761 = vmatprep.subr.bf16.mxu0 %v859_v8  ;;  %v866_v15 = vld [vmem:[%s1151_s1 + $0xa0] sm:$0xff]   ;;  %v870_v19 = vld [vmem:[%s1151_s1 + $0x98] sm:$0xff]   ;;  %v874_v23 = vld [vmem:[%s1151_s1 + $0x90] sm:$0xff]  }
   0x9   :  { %782 = vmatpush3.bf16.msra.mxu1 %v858_v7  ;;  %v875_v24 = vld [vmem:[%s1151_s1 + $0x48] sm:$0xff]   ;;  %v879_v28 = vld [vmem:[%s1151_s1 + $0x40] sm:$0xff]   ;;  %v883_v36 = vld [vmem:[%s1151_s1 + $0x178] sm:$0xff]  }
   0xa   :  { %783 = vmatprep.subr.bf16.mxu1 %v861_v10  ;;  %v876_v25 = vld [vmem:[%s1151_s1 + $0x8] sm:$0xff]   ;;  %v880_v29 = vld [vmem:[%s1151_s1] sm:$0xff]   ;;  %v25_v37 = vld [vmem:[%s1150_s0 + $0x18] sm:$0xff] }
   0xb   :  { %762 = vmatpush3.bf16.msra.mxu0 %v860_v9  ;;  %v877_v26 = vld [vmem:[%s1151_s1 + $0xc8] sm:$0xff]   ;;  %v881_v30 = vld [vmem:[%s1151_s1 + $0xc0] sm:$0xff]   ;;  %v32_v38 = vpack.c.bf16 %v25_v37, %v25_v37  ;;  %v884_v39 = vld [vmem:[%s1151_s1 + $0x138] sm:$0xff]  }
   0xc   :  { %763 = vmatprep.subr.bf16.mxu0 %v863_v12  ;;  %v878_v27 = vld [vmem:[%s1151_s1 + $0x88] sm:$0xff]   ;;  %v882_v33 = vld [vmem:[%s1151_s1 + $0x80] sm:$0xff]   ;;  %v24_v40 = vld [vmem:[%s1150_s0 + $0x10] sm:$0xff] }
   0xd   :  { %784 = vmatpush3.bf16.msra.mxu1 %v862_v11  ;;  %v23_v31 = vld [vmem:[%s1150_s0 + $0x8] sm:$0xff]  ;;  %v22_v34 = vld [vmem:[%s1150_s0] sm:$0xff]  ;;  %511 = vmatprep.mubr.bf16.mxu1 %v32_v38  ;;  %v31_v41 = vpack.c.bf16 %v24_v40, %v24_v40  ;;  %v885_v42 = vld [vmem:[%s1151_s1 + $0x170] sm:$0xff]  }
   0xe   :  { %785 = vmatprep.subr.bf16.mxu1 %v865_v14  ;;  %v30_v32 = vpack.c.bf16 %v23_v31, %v23_v31  ;;  %v29_v35 = vpack.c.bf16 %v22_v34, %v22_v34  ;;  %v886_v43 = vld [vmem:[%s1151_s1 + $0x130] sm:$0xff]   ;;  %v887_v45 = vld [vmem:[%s1151_s1 + $0x168] sm:$0xff]   ;;  %v889_v47 = vld [vmem:[%s1151_s1 + $0x160] sm:$0xff]  }
   0xf   :  { %764 = vmatpush3.bf16.msra.mxu0 %v864_v13  ;;  %v888_v46 = vld [vmem:[%s1151_s1 + $0x128] sm:$0xff]   ;;  %v890_v48 = vld [vmem:[%s1151_s1 + $0x120] sm:$0xff]   ;;  %v891_v49 = vld [vmem:[%s1151_s1 + $0x158] sm:$0xff]  }
  0x10   :  { %765 = vmatprep.subr.bf16.mxu0 %v867_v16  ;;  %471 = vmatprep.mubr.bf16.mxu0 %v30_v32  ;;  %v892_v50 = vld [vmem:[%s1151_s1 + $0x118] sm:$0xff]   ;;  %v893_v51 = vld [vmem:[%s1151_s1 + $0x150] sm:$0xff]   ;;  %v899_v53 = vld [vmem:[%s1151_s1 + $0x180] sm:$0xff]  }
  0x11   :  { %786 = vmatpush3.bf16.msra.mxu1 %v866_v15  ;;  %v894_v52 = vld [vmem:[%s1151_s1 + $0x110] sm:$0xff]   ;;  %v27_v54 = vld [vmem:[%s1150_s0 + $0x28] sm:$0xff] }
  0x12   :  { %787 = vmatprep.subr.bf16.mxu1 %v869_v18  ;;  %v895_v55 = vld [vmem:[%s1151_s1 + $0x148] sm:$0xff]   ;;  %v34_v56 = vpack.c.bf16 %v27_v54, %v27_v54  ;;  %v28_v57 = vld [vmem:[%s1150_s0 + $0x30] sm:$0xff] }
  0x13   :  { %766 = vmatpush3.bf16.msra.mxu0 %v868_v17  ;;  %v35_v58 = vpack.c.bf16 %v28_v57, %v28_v57 }
  0x14   :  { %767 = vmatprep.subr.bf16.mxu0 %v871_v20 }
  0x15   :  { %788 = vmatpush3.bf16.msra.mxu1 %v870_v19 }
  0x16   :  { %789 = vmatprep.subr.bf16.mxu1 %v873_v22 }
  0x17   :  { %768 = vmatpush3.bf16.msra.mxu0 %v872_v21 }
  0x18   :  { %769 = vmatprep.subr.bf16.mxu0 %v875_v24 }
  0x19   :  { %790 = vmatpush3.bf16.msra.mxu1 %v874_v23 }
  0x1a   :  { %791 = vmatprep.subr.bf16.mxu1 %v877_v26 }
  0x1b   :  { %770 = vmatpush3.bf16.msra.mxu0 %v876_v25 }
  0x1c   :  { %771 = vmatprep.subr.bf16.mxu0 %v879_v28 }
  0x1d   :  { %792 = vmatpush3.bf16.msra.mxu1 %v878_v27 }
  0x1e   :  { %793 = vmatprep.subr.bf16.mxu1 %v881_v30 }
  0x1f   :  { %772 = vmatpush3.bf16.msra.mxu0 %v880_v29 }
  0x20   :  { %801 = vmatprep.subr.bf16.mxu0 %v883_v36 }
  0x21   :  { %794 = vmatpush3.bf16.msra.mxu1 %v882_v33 }
  0x22   :  { %472 = vmatmul.mubr.bf16.vlgmr.msra.gmra.mxu0 %v29_v35  ;;  %830 = vmatprep.subr.bf16.mxu1 %v926_v44 }
  0x23   :  { %802 = vmatpush3.bf16.msra.mxu0 %v884_v39  ;;  %551 = vmatprep.mubr.bf16.mxu0 %v34_v56 }
  0x24   :  { %512 = vmatmul.mubr.bf16.vlgmr.msra.gmra.mxu1 %v31_v41  ;;  %803 = vmatprep.subr.bf16.mxu0 %v885_v42 }
  0x25   :  { %832 = vmatprep.mubr.msk.bf16.mxu1 %vm927_vm0, %v926_v44  ;;  %831 = vmatpush3.bf16.msra.mxu1 %v899_v53 }
  0x26   :  { %836 = vmatprep.subr.bf16.mxu1 %v926_v44 }
  0x27   :  { %804 = vmatpush3.bf16.msra.mxu0 %v886_v43 }
  0x28   :  { %805 = vmatprep.subr.bf16.mxu0 %v887_v45 }
  0x2b   :  { %806 = vmatpush3.bf16.msra.mxu0 %v888_v46 }
  0x2c   :  { %807 = vmatprep.subr.bf16.mxu0 %v889_v47 }
  0x2f   :  { %808 = vmatpush3.bf16.msra.mxu0 %v890_v48 }
  0x30   :  { %809 = vmatprep.subr.bf16.mxu0 %v891_v49 }
  0x33   :  { %810 = vmatpush3.bf16.msra.mxu0 %v892_v50 }
  0x34   :  { %811 = vmatprep.subr.bf16.mxu0 %v893_v51 }
  0x35   :  { %10 = vsyncpa [#allocation3], 0  ;;  %833 = vmatmul.mubr.msk.bf16.vlgmr.msra.gmra.mxu1 %vm435_vm1, %v35_v58  ;;  %v896_v59 = vld [vmem:[%s1151_s1 + $0x108] sm:$0xff]   ;;  %v897_v60 = vld [vmem:[%s1151_s1 + $0x140] sm:$0xff]   ;;  %vm640_vm2 = vcmask 523264   ;;  %s928_s14 = smov [#allocation2]  }
  0x36   :  { %844 = vmatprep.mubr.msk.bf16.mxu1 %vm927_vm0, %v926_v44  ;;  %v898_v61 = vld [vmem:[%s1151_s1 + $0x100] sm:$0xff]   ;;  %v900_v0 = vld [vmem:[%s1153_s3 + $0x18] sm:$0xff]   ;;  %v901_v1 = vld [vmem:[%s1153_s3 + $0x10] sm:$0xff]   ;;  %vm684_vm3 = vcmask 80896  }
  0x37   :  { %812 = vmatpush3.bf16.msra.mxu0 %v894_v52  ;;  %v26_v62 = vld [vmem:[%s1150_s0 + $0x20] sm:$0xff]  ;;  %837 = vmatpush3.bf16.msra.mxu1 %v900_v0  ;;  %v902_v2 = vld [vmem:[%s1153_s3 + $0x8] sm:$0xff]  }
  0x38   :  { %813 = vmatprep.subr.bf16.mxu0 %v895_v55  ;;  %v33_v63 = vpack.c.bf16 %v26_v62, %v26_v62  ;;  %838 = vmatprep.subr.bf16.mxu1 %v926_v44  ;;  %v903_v3 = vld [vmem:[%s1153_s3] sm:$0xff]  }
  0x39   :  { %v700_v17 = vld [vmem:[%s1152_s2] ss:$0 sm:$0xff]  ;;  %s692_s2 = sshll.u32 %s928_s14, 4  ;;  %s693_s2 = int_to_ptr.vmem [resolvable:$true] %s692_s2 }
  0x3a   :  { %v751_v30 = vld [vmem:[%s1154_s4] ss:$0 sm:$0xff]  ;;  %s904_s15 = scalar_lea.vmem %s693_s2, 128  ;;  %p909_p1 = scmp.lt.s32.totalorder %s693_s2, %s693_s2 }
  0x3b   :  { %814 = vmatpush3.bf16.msra.mxu0 %v896_v59  ;;  %839 = vmatpush3.bf16.msra.mxu1 %v901_v1  ;;  %p905_p0 = scmp.ne.s32.totalorder %s693_s2, %s904_s15  ;;  %p910_p2 = scmp.lt.s32.totalorder %s904_s15, %s904_s15 }
  0x3c   :  { %815 = vmatprep.subr.bf16.mxu0 %v897_v60  ;;  %840 = vmatprep.subr.bf16.mxu1 %v926_v44 }
  0x3d   :  { %p911_p3 = por %p910_p2, %p909_p1 }
  0x3f   :  { %816 = vmatpush3.bf16.msra.mxu0 %v898_v61  ;;  %841 = vmatpush3.bf16.msra.mxu1 %v902_v2  ;;  %p912_p4 = pnand %p911_p3, %p905_p0 }
  0x40   :  { %842 = vmatprep.subr.bf16.mxu1 %v926_v44 }
  0x42   :  { %552 = vmatmul.mubr.bf16.vlgmr.msra.gmra.mxu0 %v33_v63 }
  0x43   :  { %843 = vmatpush3.bf16.msra.mxu1 %v903_v3 }
  0xe2   :  { %v773_v4 = vpop.f32.mrf.mxu0 }
  0xe4   :  { %v774_v5 = vpop.f32.mrf.mxu0  ;;  %v795_v6 = vpop.f32.mrf.mxu1 }
  0xe5   :  { %v775_v16 = vadd.f32 %v774_v5, %v773_v4 }
  0xe6   :  { %v776_v7 = vpop.f32.mrf.mxu0  ;;  %v796_v8 = vpop.f32.mrf.mxu1 }
  0xe7   :  { %v474_v18 = vadd.f32 %v775_v16, %v700_v17  ;;  %v797_v19 = vadd.f32 %v796_v8, %v795_v6 }
  0xe8   :  { %v777_v9 = vpop.f32.mrf.mxu0  ;;  %v798_v10 = vpop.f32.mrf.mxu1 }
  0xe9   :  { %v514_v22 = vadd.f32 %v797_v19, %v474_v18 }
  0xea   :  { %v799_v11 = vpop.f32.mrf.mxu1 }
  0xf5   :  { %v593_v12 = vpop.f32.mrf.mxu1 }
  0xf7   :  { %v834_v13 = vpop.f32.mrf.mxu1 }
  0xf9   :  { %v596_v14 = vpop.f32.mrf.mxu1 }
  0xfb   :  { %v835_v15 = vpop.f32.mrf.mxu1 }
 0x102   :  { %v817_v20 = vpop.f32.mrf.mxu0 }
 0x104   :  { %v818_v21 = vpop.f32.mrf.mxu0 }
 0x105   :  { %v819_v23 = vadd.f32 %v818_v21, %v817_v20 }
 0x106   :  { %v820_v24 = vpop.f32.mrf.mxu0 }
 0x107   :  { %v554_v25 = vadd.f32 %v819_v23, %v514_v22 }
 0x108   :  { %v821_v26 = vpop.f32.mrf.mxu0 }
 0x109   :  { %v594_v27 = vadd.f32 %v593_v12, %v554_v25 }
 0x10b   :  { %v599_v28 = vmax.f32 %v594_v27, 0.0 }
 0x10d   :  { %v600_v29 = vpack.c.bf16 %v599_v28, %v599_v28 }
 0x10f   :  { %845 = vmatmul.mubr.msk.bf16.vlgmr.msra.gmra.mxu1 %vm640_vm2, %v600_v29 }
 0x1cf   :  { %v678_v31 = vpop.f32.mrf.mxu1 }
 0x1d0   :  { %v679_v32 = vadd.f32 %v751_v30, %v678_v31 }
 0x1d1   :  { %v846_v33 = vpop.f32.mrf.mxu1 }
 0x1d2   :  { %685 = vst.msk [vmem:[#allocation2] sm:$0xff] %vm684_vm3, %v679_v32 }
 0x1d3   :  { %v681_v34 = vpop.f32.mrf.mxu1 }
 0x1d4   :  { %915 = shalt.err (!%p912_p4)
}
 0x1d5   :  { %695 = dma.vmem_to_hbm [thread:$0]  %s693_s2, 128, %s1155_s5, [#allocation3]   ;;  %v847_v35 = vpop.f32.mrf.mxu1 }
 0x1d6   :  { %924 = dma.done.wait [#allocation3], 128  }
 0x1d7   :  { %925 = vsyncadd [#allocation3], 4294967168 }
 0x1d8   :  { %699 = vsyncpa [#allocation3], 1 }

</bundles_post_ra>
